<compile_context>
chip_gen: v7x
topology: tpu7x:2x2x1
jax: 0.10.0
libtpu: 0.0.40
codegen_flags: <defaults>
</compile_context>

<pallas_src>
import functools

import jax
import jax.numpy as jnp
from jax.experimental import pallas as pl
from jax.experimental.pallas import tpu as pltpu


def _contrastive_kernel(x0_ref, x1_ref, y_ref, loss_ref, pred_ref, *, margin):
    # (TB, D) feature tiles; compute in f32 regardless of storage dtype.
    x0 = x0_ref[...].astype(jnp.float32)
    x1 = x1_ref[...].astype(jnp.float32)
    y = y_ref[...].astype(jnp.float32)                    # (TB, 1)

    diff = x0 - x1                                        # (TB, D)   VPU
    sq = jnp.sum(diff * diff, axis=1, keepdims=True)      # (TB, 1) == dist**2
    dist = jnp.sqrt(sq)                                   # EUP; needed for hinge
    hinge = jnp.maximum(margin - dist, 0.0)               # clamp(margin-dist, 0)

    # Per-example contrastive loss; reduced to a scalar in the wrapper so each
    # grid step writes only its own disjoint block (keeps the axis parallel).
    loss_ref[...] = 0.5 * (y * sq + (1.0 - y) * (hinge * hinge))

    # prediction = dist < margin/2  <=>  sq < (margin/2)^2 (margin is static).
    half = margin * 0.5
    if half > 0.0:
        pred_ref[...] = (sq < half * half).astype(jnp.float32)
    else:
        pred_ref[...] = jnp.zeros_like(sq)


def contrastive_loss(x0, x1, labels, margin, *, block_b=None,
                     vmem_budget_bytes=24 * 1024 * 1024):
    """x0, x1: (B, D) float arrays (any float dtype); labels: (B,) or (B, 1)."""
    B, D = x0.shape
    assert x1.shape == (B, D)

    labels2d = labels.reshape(B, 1)
    if not jnp.issubdtype(labels2d.dtype, jnp.floating):
        labels2d = labels2d.astype(jnp.float32)   # tiny (B,1) array; negligible

    bx0 = jnp.dtype(x0.dtype).itemsize
    bx1 = jnp.dtype(x1.dtype).itemsize
    # Sublane packing of the narrowest feature dtype: f32 -> 8, bf16 -> 16, i8 -> 32.
    sublane = 8 * max(1, 4 // max(1, min(bx0, bx1)))

    if block_b is None:
        # Double-buffered (TB, D) x0/x1 tiles dominate VMEM; the three (TB, 1)
        # arrays pad to 128 lanes (f32) in VMEM.
        per_row = 2 * D * (bx0 + bx1) + 3 * 2 * 128 * 4
        block_b = vmem_budget_bytes // per_row
    block_b = int(max(1, min(block_b, 1024, B)))
    if B >= sublane:
        block_b = max(sublane, (block_b // sublane) * sublane)
    else:
        block_b = B
    num_tiles = pl.cdiv(B, block_b)

    kernel = functools.partial(_contrastive_kernel, margin=float(margin))

    cost = pl.CostEstimate(
        flops=int(3 * B * D + 8 * B),
        transcendentals=int(B),
        bytes_accessed=int(B * D * (bx0 + bx1)
                           + B * jnp.dtype(labels2d.dtype).itemsize
                           + 2 * B * 4),
    )

    per_example_loss, pred = pl.pallas_call(
        kernel,
        grid=(num_tiles,),
        in_specs=[
            pl.BlockSpec((block_b, D), lambda i: (i, 0)),
            pl.BlockSpec((block_b, D), lambda i: (i, 0)),
            pl.BlockSpec((block_b, 1), lambda i: (i, 0)),
        ],
        out_specs=(
            pl.BlockSpec((block_b, 1), lambda i: (i, 0)),   # per-example loss
            pl.BlockSpec((block_b, 1), lambda i: (i, 0)),   # prediction
        ),
        out_shape=(
            jax.ShapeDtypeStruct((B, 1), jnp.float32),
            jax.ShapeDtypeStruct((B, 1), jnp.float32),
        ),
        compiler_params=pltpu.CompilerParams(
            dimension_semantics=("parallel",),        # v7x: both TCs stream batch
            vmem_limit_bytes=32 * 1024 * 1024,        # above v5e's 16 MiB default
        ),
        cost_estimate=cost,
    )(x0, x1, labels2d)

    loss = jnp.sum(per_example_loss)   # tiny B-length reduction outside the kernel
    return loss, pred


def _reference(x0, x1, labels, margin):
    x0 = x0.astype(jnp.float32)
    x1 = x1.astype(jnp.float32)
    dist = jnp.sqrt(jnp.sum((x0 - x1) ** 2, axis=1))
    y = labels.reshape(-1).astype(jnp.float32)
    loss = jnp.sum(0.5 * y * dist ** 2
                   + 0.5 * (1.0 - y) * jnp.maximum(margin - dist, 0.0) ** 2)
    pred = (dist < margin * 0.5).astype(jnp.float32)[:, None]
    return loss, pred


if __name__ == "__main__":
    key = jax.random.PRNGKey(0)
    k0, k1, k2 = jax.random.split(key, 3)

    B, D = 72, 32          # small; 72 = 2*32 + 8 exercises a partial edge tile
    margin = 1.0

    x0 = jax.random.normal(k0, (B, D), dtype=jnp.float32)
    x1 = jax.random.normal(k1, (B, D), dtype=jnp.float32)
    labels = jax.random.bernoulli(k2, 0.5, (B, 1)).astype(jnp.float32)

    # f32 path, forced multi-tile grid (3 tiles of 32 rows, last one partial).
    loss, pred = contrastive_loss(x0, x1, labels, margin, block_b=32)
    jax.block_until_ready((loss, pred))

    ref_loss, ref_pred = _reference(x0, x1, labels, margin)
    assert pred.shape == (B, 1)
    assert jnp.allclose(loss, ref_loss, rtol=1e-5, atol=1e-5), (loss, ref_loss)
    assert jnp.array_equal(pred, ref_pred)

    # bf16 storage path: native-dtype HBM stream, f32 compute inside the kernel.
    x0b = x0.astype(jnp.bfloat16)
    x1b = x1.astype(jnp.bfloat16)
    loss_b, pred_b = contrastive_loss(x0b, x1b, labels, margin)
    jax.block_until_ready((loss_b, pred_b))
    ref_loss_b, _ = _reference(x0b, x1b, labels, margin)
    assert jnp.allclose(loss_b, ref_loss_b, rtol=1e-4, atol=1e-4), (loss_b, ref_loss_b)

    print("KERNEL_OK")
</pallas_src>

<mosaic_0001>
module attributes {stable_mosaic.version = 11 : i64} {
  func.func @_contrastive_kernel(%arg0: i32, %arg1: memref<32x32xf32, #tpu.memory_space<vmem>>, %arg2: memref<32x32xf32, #tpu.memory_space<vmem>>, %arg3: memref<32x1xf32, #tpu.memory_space<vmem>>, %arg4: memref<32x1xf32, #tpu.memory_space<vmem>>, %arg5: memref<32x1xf32, #tpu.memory_space<vmem>>) attributes {dimension_semantics = [#tpu.dimension_semantics<parallel>], iteration_bounds = array<i64: 3>, scalar_prefetch = 0 : i64, scratch_operands = 0 : i64, tpu.core_type = #tpu.core_type<tc>, window_params = [{transform_indices = @transform_0, window_bounds = array<i64: 32, 32>}, {transform_indices = @transform_1, window_bounds = array<i64: 32, 32>}, {transform_indices = @transform_2, window_bounds = array<i64: 32, 1>}, {transform_indices = @transform_3, window_bounds = array<i64: 32, 1>}, {transform_indices = @transform_4, window_bounds = array<i64: 32, 1>}]} {
    %c0 = arith.constant 0 : index
    %c0_0 = arith.constant 0 : index
    %0 = vector.load %arg1[%c0, %c0_0] : memref<32x32xf32, #tpu.memory_space<vmem>>, vector<32x32xf32>
    %c0_1 = arith.constant 0 : index
    %c0_2 = arith.constant 0 : index
    %1 = vector.load %arg2[%c0_1, %c0_2] : memref<32x32xf32, #tpu.memory_space<vmem>>, vector<32x32xf32>
    %c0_3 = arith.constant 0 : index
    %c0_4 = arith.constant 0 : index
    %2 = vector.load %arg3[%c0_3, %c0_4] : memref<32x1xf32, #tpu.memory_space<vmem>>, vector<32x1xf32>
    %3 = arith.subf %0, %1 : vector<32x32xf32>
    %4 = arith.mulf %3, %3 : vector<32x32xf32>
    %cst = arith.constant dense<0.000000e+00> : vector<32xf32>
    %5 = vector.multi_reduction <add>, %4, %cst [1] : vector<32x32xf32> to vector<32xf32>
    %6 = vector.shape_cast %5 : vector<32xf32> to vector<32x1xf32>
    %7 = math.sqrt %6 : vector<32x1xf32>
    %cst_5 = arith.constant 1.000000e+00 : f32
    %8 = vector.broadcast %cst_5 : f32 to vector<32x1xf32>
    %9 = arith.subf %8, %7 : vector<32x1xf32>
    %cst_6 = arith.constant 0.000000e+00 : f32
    %10 = vector.broadcast %cst_6 : f32 to vector<32x1xf32>
    %11 = arith.maximumf %9, %10 : vector<32x1xf32>
    %12 = arith.mulf %2, %6 : vector<32x1xf32>
    %cst_7 = arith.constant 1.000000e+00 : f32
    %13 = vector.broadcast %cst_7 : f32 to vector<32x1xf32>
    %14 = arith.subf %13, %2 : vector<32x1xf32>
    %15 = arith.mulf %11, %11 : vector<32x1xf32>
    %16 = arith.mulf %14, %15 : vector<32x1xf32>
    %17 = arith.addf %12, %16 : vector<32x1xf32>
    %cst_8 = arith.constant 5.000000e-01 : f32
    %18 = vector.broadcast %cst_8 : f32 to vector<32x1xf32>
    %19 = arith.mulf %18, %17 : vector<32x1xf32>
    %c0_9 = arith.constant 0 : index
    %c0_10 = arith.constant 0 : index
    %20 = vector.load %arg4[%c0_9, %c0_10] : memref<32x1xf32, #tpu.memory_space<vmem>>, vector<32x1xf32>
    tpu.vector_store %arg4[%c0_9, %c0_10], %19 {strides = array<i32>} : memref<32x1xf32, #tpu.memory_space<vmem>>, vector<32x1xf32>,
    %cst_11 = arith.constant 2.500000e-01 : f32
    %21 = vector.broadcast %cst_11 : f32 to vector<32x1xf32>
    %22 = arith.cmpf olt, %6, %21 : vector<32x1xf32>
    %23 = arith.extui %22 : vector<32x1xi1> to vector<32x1xi32>
    %24 = arith.sitofp %23 : vector<32x1xi32> to vector<32x1xf32>
    %c0_12 = arith.constant 0 : index
    %c0_13 = arith.constant 0 : index
    %25 = vector.load %arg5[%c0_12, %c0_13] : memref<32x1xf32, #tpu.memory_space<vmem>>, vector<32x1xf32>
    tpu.vector_store %arg5[%c0_12, %c0_13], %24 {strides = array<i32>} : memref<32x1xf32, #tpu.memory_space<vmem>>, vector<32x1xf32>,
    return
  }
  func.func @transform_0(%arg0: i32) -> (i32, i32) {
    %c0_i32 = arith.constant 0 : i32
    %c0_i32_0 = arith.constant 0 : i32
    return %arg0, %c0_i32 : i32, i32
  }
  func.func @transform_1(%arg0: i32) -> (i32, i32) {
    %c0_i32 = arith.constant 0 : i32
    %c0_i32_0 = arith.constant 0 : i32
    return %arg0, %c0_i32 : i32, i32
  }
  func.func @transform_2(%arg0: i32) -> (i32, i32) {
    %c0_i32 = arith.constant 0 : i32
    %c0_i32_0 = arith.constant 0 : i32
    return %arg0, %c0_i32 : i32, i32
  }
  func.func @transform_3(%arg0: i32) -> (i32, i32) {
    %c0_i32 = arith.constant 0 : i32
    %c0_i32_0 = arith.constant 0 : i32
    return %arg0, %c0_i32 : i32, i32
  }
  func.func @transform_4(%arg0: i32) -> (i32, i32) {
    %c0_i32 = arith.constant 0 : i32
    %c0_i32_0 = arith.constant 0 : i32
    return %arg0, %c0_i32 : i32, i32
  }
}

</mosaic_0001>

<bundles_post_ra>
// kernel: tpu_custom_call.1
= control target key start
LH: loop header
LB: loop body
LE: loop exit
PB: predicated region body
PF: predicated region fallthrough
CT: control target
= control target key end

     0   :  { %s1277_s15 = smov 0   ;;  %s1279_s16 = smov 0   ;;  %s1502_s0 = inlined_call_operand.vmem [shape: f32[72,32], index: 0, kind: input, shape index: {}]   ;;  %s1503_s1 = inlined_call_operand.vmem [shape: f32[72,32], index: 1, kind: input, shape index: {}]   ;;  %s1504_s2 = inlined_call_operand.vmem [shape: f32[72,1], index: 2, kind: input, shape index: {}]   ;;  %s1505_s3 = inlined_call_operand.vmem [shape: f32[72,1], index: 3, kind: output, shape index: {0}]   ;;  %s1506_s4 = inlined_call_operand.vmem [shape: f32[72,1], index: 4, kind: output, shape index: {1}]  }
   0x1   :  { %s1281_s17 = smov 0  }
   0x2 LB: > { %s1290_s18 = sadd.s32 4294967295, %s1185_s17   ;;  %s1292_s19 = sadd.s32 1, %s1185_s17   ;;  %s1185_s17 = sphi %s1281_s17, %s1516_s17   ;;  %s1181_s16 = sphi %s1279_s16, %s1515_s16   ;;  %s1177_s15 = sphi %s1277_s15, %s1514_s15  }
   0x3   : > { %s97_s20 = ssub.s32 %s1185_s17, %s1292_s19  ;;  %s100_s21 = sadd.s32 1, %s1181_s16 }
   0x4   : > { %p98_p0 = scmp.eq.s32.totalorder %s97_s20, 0  ;;  %p110_p1 = scmp.ne.s32.totalorder %s1181_s16, %s1177_s15 }
   0x5   : > { %p111_p2 = scmp.eq.s32.totalorder %s1290_s18, 2  ;;  %p887_p3 = scmp.ge.s32.totalorder %s1185_s17, 1 }
   0x6   : > { %s1300_s22 = scalar_select %p98_p0, %s1181_s16, %s100_s21  }
   0x7   : > { %p1302_p4 = por %p111_p2, %p110_p1  ;;  %p212_p5 = scmp.lt.s32.totalorder %s1185_s17, 4 }
   0x9   : > { %p213_p6 = pnand %p887_p3, %p212_p5 }
   0xa   : > { %s1307_s24 = sshll.u32 (!%p213_p6), %s1290_s18, 2  ;;  %vm335_vm0 = vcmask (!%p213_p6), 261120   ;;  %s254_s7 = sand.u32 (!%p213_p6), 1, %s1177_s15   ;;  %vm408_vm2 = vcmask (!%p213_p6), 7168   ;;  %v1251_v22 = vmov (!%p213_p6), 0.0  }
   0xb   : > { %216 = sbr.rel (%p213_p6) target bundleno = 309 (0x135), region = 32  ;;  %p268_p7 = scmp.lt.s32.totalorder (!%p213_p6), %s1307_s24, 8 }
   0xc   : > { %s1326_s8 = sshll.u32 (!%p213_p6), %s254_s7, 5 }
   0xd   : > { %s1340_s9 = scalar_lea.vmem (!%p213_p6), [#allocation3], %s1326_s8   ;;  %s1389_s13 = scalar_lea.vmem (!%p213_p6), [#allocation2], %s1326_s8  }
  0x12   : > { %s269_s25 = scalar_select %p268_p7, %s1307_s24, 8 }
  0x13   : > { %s441_s14 = ssub.s32 (%p1302_p4), 9, %s1307_s24  ;;  %s932_s15 = sshll.u32 (%p1302_p4), %s1290_s18, 5 }
  0x14   : > { %s1311_s26 = sshll.u32 %s269_s25, 3  ;;  %p442_p8 = scmp.lt.s32.totalorder (%p1302_p4), %s441_s14, 4 }
  0x15   : > { %s271_s29 = scalar_lea.vmem %s1502_s0, %s1311_s26  ;;  %s285_s6 = scalar_lea.vmem %s1503_s1, %s1311_s26 }
  0x16   : > { %v317_v0 = vld [vmem:[%s271_s29 + $0x10] sm:$0xff]  ;;  %v315_v2 = vld [vmem:[%s271_s29] sm:$0xff]  ;;  %v318_v5 = vld [vmem:[%s271_s29 + $0x18] sm:$0xff]  ;;  %s1357_s12 = scalar_lea.vmem %s1504_s2, %s1311_s26  ;;  %s1407_s21 = scalar_lea.vmem (%p1302_p4), %s1505_s3, %s932_s15  }
  0x17   : > { %v321_v1 = vld [vmem:[%s285_s6 + $0x10] sm:$0xff]  ;;  %v319_v4 = vld [vmem:[%s285_s6] sm:$0xff]  ;;  %v322_v8 = vld [vmem:[%s285_s6 + $0x18] sm:$0xff] }
  0x18   : > { %v329_v3 = vsub.f32 %v317_v0, %v321_v1  ;;  %v327_v7 = vsub.f32 %v315_v2, %v319_v4  ;;  %v316_v9 = vld [vmem:[%s271_s29 + $0x8] sm:$0xff]  ;;  %v330_v11 = vsub.f32 %v318_v5, %v322_v8  ;;  %v323_v32 = vld [vmem:[%s1357_s12] sm:$0xff]  ;;  %v325_v34 = vld [vmem:[%s1357_s12 + $0x10] sm:$0xff] }
  0x19   : > { %v320_v10 = vld [vmem:[%s285_s6 + $0x8] sm:$0xff]  ;;  %v388_v35 = vsub.f32 1.0, %v323_v32  ;;  %v390_v39 = vsub.f32 1.0, %v325_v34  ;;  %v326_v54 = vld [vmem:[%s1357_s12 + $0x18] sm:$0xff] }
  0x1a   : > { %v333_v6 = vmul.f32 %v329_v3, %v329_v3  ;;  %v328_v12 = vsub.f32 %v316_v9, %v320_v10  ;;  %v331_v14 = vmul.f32 %v327_v7, %v327_v7  ;;  %v334_v15 = vmul.f32 %v330_v11, %v330_v11  ;;  %v324_v62 = vld [vmem:[%s1357_s12 + $0x8] sm:$0xff] }
  0x1b   : > { %v391_v59 = vsub.f32 1.0, %v326_v54  ;;  %v389_v3 = vsub.f32 1.0, %v324_v62 }
  0x1c   : > { %v342_v13 = vsel %vm335_vm0, %v333_v6, 0.0  ;;  %v332_v16 = vmul.f32 %v328_v12, %v328_v12  ;;  %v336_v17 = vsel %vm335_vm0, %v331_v14, 0.0  ;;  %v345_v18 = vsel %vm335_vm0, %v334_v15, 0.0 }
  0x1d   : > { %343 = vadd.xlane.f32.xlu1 %v342_v13  ;;  %337 = vadd.xlane.f32.xlu0 %v336_v17 }
  0x1e   : > { %v339_v19 = vsel %vm335_vm0, %v332_v16, 0.0 }
  0x21   : > { %346 = vadd.xlane.f32.xlu1 %v345_v18  ;;  %340 = vadd.xlane.f32.xlu0 %v339_v19 }
  0xaa   : > { %v1328_v20 = vpop.xlane.xlu1 %343  ;;  %v1332_v21 = vpop.xlane.xlu0 %337 }
  0xab   : > { %1091 = vrsqrt.f32 %v1328_v20  ;;  %vm415_vm1 = vcmp.lt.f32.partialorder %v1328_v20, 0.25  ;;  %vm413_vm3 = vcmp.lt.f32.partialorder %v1332_v21, 0.25  ;;  %vm364_vm6 = vcmp.eq.f32.partialorder %v1328_v20, inf }
  0xac   : > { %1093 = vrsqrt.f32 %v1332_v21  ;;  %v898_v23 = vsel %vm415_vm1, 1.0, %v1251_v22  ;;  %v896_v25 = vsel %vm413_vm3, 1.0, %v1251_v22  ;;  %v367_v33 = vand.u32 2147483648, %v1328_v20 }
  0xad   : > { %427 = vst.msk [vmem:[%s1340_s9 + $0x10] sm:$0xff] %vm408_vm2, %v898_v23  ;;  %425 = vst.msk [vmem:[%s1340_s9] sm:$0xff] %vm408_vm2, %v896_v25  ;;  %vm366_vm7 = vcmp.eq.f32.partialorder %v1328_v20, 0.0  ;;  %vm350_vm8 = vcmp.eq.f32.partialorder %v1332_v21, inf  ;;  %v353_v41 = vand.u32 2147483648, %v1332_v21  ;;  %vm352_vm9 = vcmp.eq.f32.partialorder %v1332_v21, 0.0 }
  0xae   : > { %v1336_v24 = vpop.xlane.xlu1 %346  ;;  %v1345_v26 = vpop.xlane.xlu0 %340  ;;  %v386_v60 = vmul.f32 %v1328_v20, %v325_v34  ;;  %v384_v4 = vmul.f32 %v1332_v21, %v323_v32 }
  0xaf   : > { %1095 = vrsqrt.f32 %v1336_v24  ;;  %vm416_vm4 = vcmp.lt.f32.partialorder %v1336_v24, 0.25  ;;  %vm414_vm5 = vcmp.lt.f32.partialorder %v1345_v26, 0.25  ;;  %vm371_vm10 = vcmp.eq.f32.partialorder %v1336_v24, inf }
  0xb0   : > { %v899_v27 = vsel %vm416_vm4, 1.0, %v1251_v22  ;;  %1097 = vrsqrt.f32 %v1345_v26  ;;  %v897_v28 = vsel %vm414_vm5, 1.0, %v1251_v22  ;;  %vm373_vm11 = vcmp.eq.f32.partialorder %v1336_v24, 0.0 }
  0xb1   : > { %428 = vst.msk [vmem:[%s1340_s9 + $0x18] sm:$0xff] %vm408_vm2, %v899_v27  ;;  %426 = vst.msk [vmem:[%s1340_s9 + $0x8] sm:$0xff] %vm408_vm2, %v897_v28  ;;  %v374_v47 = vand.u32 2147483648, %v1336_v24  ;;  %vm357_vm12 = vcmp.eq.f32.partialorder %v1345_v26, inf  ;;  %vm359_vm13 = vcmp.eq.f32.partialorder %v1345_v26, 0.0  ;;  %v360_v53 = vand.u32 2147483648, %v1345_v26 }
  0xb2   : > { %v387_v9 = vmul.f32 %v1336_v24, %v326_v54  ;;  %v385_v16 = vmul.f32 %v1345_v26, %v324_v62 }
  0xb5   : > { %v1092_v29 = vpop.eup %1091 }
  0xb6   : > { %v363_v30 = vmul.f32 %v1092_v29, %v1328_v20  ;;  %v1094_v31 = vpop.eup %1093 }
  0xb7   : > { %v349_v37 = vmul.f32 %v1094_v31, %v1332_v21 }
  0xb8   : > { %v365_v36 = vsel %vm364_vm6, %v1328_v20, %v363_v30 }
  0xb9   : > { %v1096_v38 = vpop.eup %1095  ;;  %v368_v40 = vsel %vm366_vm7, %v367_v33, %v365_v36  ;;  %v351_v43 = vsel %vm350_vm8, %v1332_v21, %v349_v37 }
  0xba   : > { %v378_v42 = vsub.f32 1.0, %v368_v40  ;;  %v370_v44 = vmul.f32 %v1096_v38, %v1336_v24  ;;  %v1098_v45 = vpop.eup %1097  ;;  %v354_v46 = vsel %vm352_vm9, %v353_v41, %v351_v43 }
  0xbb   : > { %v376_v49 = vsub.f32 1.0, %v354_v46  ;;  %v356_v51 = vmul.f32 %v1098_v45, %v1345_v26 }
  0xbc   : > { %v382_v48 = vmax.f32 %v378_v42, 0.0  ;;  %v372_v50 = vsel %vm371_vm10, %v1336_v24, %v370_v44 }
  0xbd   : > { %v375_v52 = vsel %vm373_vm11, %v374_v47, %v372_v50  ;;  %v380_v56 = vmax.f32 %v376_v49, 0.0  ;;  %v358_v58 = vsel %vm357_vm12, %v1345_v26, %v356_v51 }
  0xbe   : > { %v394_v55 = vmul.f32 %v382_v48, %v382_v48  ;;  %v379_v57 = vsub.f32 1.0, %v375_v52  ;;  %v361_v61 = vsel %vm359_vm13, %v360_v53, %v358_v58 }
  0xbf   : > { %v392_v0 = vmul.f32 %v380_v56, %v380_v56  ;;  %v377_v2 = vsub.f32 1.0, %v361_v61 }
  0xc0   : > { %v398_v63 = vmul.f32 %v394_v55, %v390_v39  ;;  %v383_v1 = vmax.f32 %v379_v57, 0.0 }
  0xc1   : > { %v396_v6 = vmul.f32 %v392_v0, %v388_v35  ;;  %v381_v8 = vmax.f32 %v377_v2, 0.0 }
  0xc2   : > { %v402_v5 = vadd.f32 %v398_v63, %v386_v60  ;;  %v395_v7 = vmul.f32 %v383_v1, %v383_v1 }
  0xc3   : > { %v400_v11 = vadd.f32 %v396_v6, %v384_v4  ;;  %v393_v13 = vmul.f32 %v381_v8, %v381_v8 }
  0xc4   : > { %v406_v10 = vmul.f32 0.5, %v402_v5  ;;  %v399_v12 = vmul.f32 %v395_v7, %v391_v59 }
  0xc5   : > { %v404_v14 = vmul.f32 0.5, %v400_v11  ;;  %v397_v17 = vmul.f32 %v393_v13, %v389_v3  ;;  %439 = sbr.rel (!%p1302_p4) target bundleno = 253 (0xfd), region = 36 }
  0xc6   : > { %v403_v15 = vadd.f32 %v399_v12, %v387_v9  ;;  %411 = vst.msk [vmem:[%s1389_s13 + $0x10] sm:$0xff] %vm408_vm2, %v406_v10 }
  0xc7   : > { %409 = vst.msk [vmem:[%s1389_s13] sm:$0xff] %vm408_vm2, %v404_v14  ;;  %v401_v19 = vadd.f32 %v397_v17, %v385_v16 }
  0xc8   : > { %v407_v18 = vmul.f32 0.5, %v403_v15 }
  0xc9   : > { %v405_v20 = vmul.f32 0.5, %v401_v19 }
  0xca   : > { %412 = vst.msk [vmem:[%s1389_s13 + $0x18] sm:$0xff] %vm408_vm2, %v407_v18 }
  0xcb   : > { %410 = vst.msk [vmem:[%s1389_s13 + $0x8] sm:$0xff] %vm408_vm2, %v405_v20 }
  0xcc   : > { %s1518_s14 = smov (!%p442_p8, %s441_s14), 4 }
  0xcd   : > { %s903_s25 = sshll.u32 %s1518_s14, 7 }
  0xce   : > { %p906_p9 = scmp.eq.s32.totalorder %s903_s25, 0 }
  0xcf   : > { %s1413_s26 = sshrl.u32 (!%p906_p9), %s1518_s14, 2 }
  0xd0   : > { %450 = sbr.rel (%p906_p9) target bundleno = 253 (0xfd), region = 40  ;;  %p907_p10 = scmp.le.s32.totalorder (!%p906_p9), %s1413_s26, 0 }
  0xd7   : > { %791 = sbr.rel (%p907_p10) target bundleno = 232 (0xe8), region = 194  ;;  %s1508_s27 = smov (!%p907_p10), %s1407_s21 }
  0xd8   : > { %s1509_s28 = smov (!%p907_p10), %s1389_s13  ;;  %s1422_s29 = smov (!%p907_p10), 0  }
  0xd9   : > { %s1199_s30 = smov (!%p907_p10), 0  }
  0xde LB: >> { %v518_v21 = vld [vmem:[%s1193_s28] sm:$0xff]  ;;  %v520_v22 = vld [vmem:[%s1193_s28 + $0x8] sm:$0xff]  ;;  %v522_v23 = vld [vmem:[%s1193_s28 + $0x10] sm:$0xff]  ;;  %s526_s5 = sadd.s32 1, %s1197_s29  ;;  %s512_s30 = sadd.s32 1, %s1201_s30   ;;  %s1201_s30 = sphi %s1199_s30, %s512_s30   ;;  %s1197_s29 = sphi %s1422_s29, %s1510_s29   ;;  %s1193_s28 = sphi %s1509_s28, %s531_s28   ;;  %s1189_s27 = sphi %s1508_s27, %s532_s27  }
  0xdf   : >> { %519 = vst [vmem:[%s1189_s27] sm:$0xff] %v518_v21  ;;  %521 = vst [vmem:[%s1189_s27 + $0x8] sm:$0xff] %v520_v22  ;;  %v524_v24 = vld [vmem:[%s1193_s28 + $0x18] sm:$0xff]  ;;  %p527_p11 = scmp.ge.s32.totalorder %s526_s5, %s1413_s26  ;;  %p511_p12 = scmp.ge.s32.totalorder %s512_s30, %s1413_s26 }
  0xe0   : >> { %523 = vst [vmem:[%s1189_s27 + $0x10] sm:$0xff] %v522_v23  ;;  %525 = vst [vmem:[%s1189_s27 + $0x18] sm:$0xff] %v524_v24 }
  0xe1   : >> { %s1520_s5 = smov (%p527_p11, %s526_s5), 0  ;;  %514 = sbr.rel (!%p511_p12) target bundleno = 222 (0xde), region = 200 }
  0xe2   : >> { %s908_s6 = sshll.u32 %s1520_s5, 5  ;;  %s1510_s29 = smov %s1520_s5 }
  0xe3   : >> { %s531_s28 = scalar_lea.vmem %s1389_s13, %s908_s6 [#allocation2]   ;;  %s532_s27 = scalar_lea.vmem %s1407_s21, %s908_s6  }
  0xe8 PF: > { %s1438_s7 = sand.u32 3, %s1518_s14   ;;  %s933_s8 = sshll.u32 %s1413_s26, 5 }
  0xe9   : > { %s537_s10 = scalar_lea.vmem %s1389_s13, %s933_s8 [#allocation2]   ;;  %s539_s11 = scalar_lea.vmem %s1407_s21, %s933_s8  }
  0xea   : > { %p913_p13 = scmp.le.s32.totalorder %s1438_s7, 0 }
  0xeb   : > { %s1203_s12 = smov (!%p913_p13), %s539_s11   ;;  %s1207_s15 = smov (!%p913_p13), %s537_s10  }
  0xec   : > { %805 = sbr.rel (%p913_p13) target bundleno = 253 (0xfd), region = 205  ;;  %s1211_s17 = smov (!%p913_p13), 0  }
  0xed   : > { %s1215_s20 = smov (!%p913_p13), 0  }
  0xf3 LB: >> { %v549_v25 = vld [vmem:[%s1209_s15] sm:$0xff]  ;;  %s551_s14 = sadd.s32 1, %s1213_s17  ;;  %s543_s20 = sadd.s32 1, %s1217_s20   ;;  %s1217_s20 = sphi %s1215_s20, %s543_s20   ;;  %s1213_s17 = sphi %s1211_s17, %s1212_s17   ;;  %s1209_s15 = sphi %s1207_s15, %s556_s15   ;;  %s1205_s12 = sphi %s1203_s12, %s557_s12  }
  0xf4   : >> { %550 = vst [vmem:[%s1205_s12] sm:$0xff] %v549_v25  ;;  %p552_p0 = scmp.ge.s32.totalorder %s551_s14, %s1438_s7  ;;  %p542_p1 = scmp.ge.s32.totalorder %s543_s20, %s1438_s7 }
  0xf6   : >> { %s1522_s14 = smov (%p552_p0, %s551_s14), 0  ;;  %545 = sbr.rel (!%p542_p1) target bundleno = 243 (0xf3), region = 211 }
  0xf7   : >> { %s914_s13 = sshll.u32 %s1522_s14, 3  ;;  %s1212_s17 = smov %s1522_s14  }
  0xf8   : >> { %s556_s15 = scalar_lea.vmem %s537_s10, %s914_s13 [#allocation2]   ;;  %s557_s12 = scalar_lea.vmem %s539_s11, %s914_s13  }
  0xfd PF: > { %563 = sbr.rel (!%p1302_p4) target bundleno = 309 (0x135), region = 88  ;;  %s565_s21 = ssub.s32 (%p1302_p4), 9, %s1307_s24 }
  0xfe   : > { %s935_s25 = sshll.u32 (%p1302_p4), %s1290_s18, 5  ;;  %p566_p2 = scmp.lt.s32.totalorder (%p1302_p4), %s565_s21, 4 }
  0xff   : > { %s1453_s28 = scalar_lea.vmem (%p1302_p4), %s1506_s4, %s935_s25  }
 0x104   : > { %s1524_s21 = smov (!%p566_p2, %s565_s21), 4 }
 0x105   : > { %s917_s29 = sshll.u32 %s1524_s21, 7 }
 0x106   : > { %p920_p3 = scmp.eq.s32.totalorder %s917_s29, 0 }
 0x107   : > { %s1459_s30 = sshrl.u32 (!%p920_p3), %s1524_s21, 2 }
 0x108   : > { %574 = sbr.rel (%p920_p3) target bundleno = 309 (0x135), region = 92  ;;  %p921_p4 = scmp.le.s32.totalorder (!%p920_p3), %s1459_s30, 0 }
 0x10f   : > { %819 = sbr.rel (%p921_p4) target bundleno = 288 (0x120), region = 216  ;;  %s1511_s18 = smov (!%p921_p4), %s1453_s28 }
 0x110   : > { %s1512_s23 = smov (!%p921_p4), %s1340_s9  ;;  %s1468_s24 = smov (!%p921_p4), 0  }
 0x111   : > { %s1231_s5 = smov (!%p921_p4), 0  }
 0x116 LB: >> { %v642_v26 = vld [vmem:[%s1225_s23] sm:$0xff]  ;;  %v644_v27 = vld [vmem:[%s1225_s23 + $0x8] sm:$0xff]  ;;  %v646_v28 = vld [vmem:[%s1225_s23 + $0x10] sm:$0xff]  ;;  %s650_s6 = sadd.s32 1, %s1229_s24  ;;  %s636_s5 = sadd.s32 1, %s1233_s5   ;;  %s1233_s5 = sphi %s1231_s5, %s636_s5   ;;  %s1229_s24 = sphi %s1468_s24, %s1513_s24   ;;  %s1225_s23 = sphi %s1512_s23, %s655_s23   ;;  %s1221_s18 = sphi %s1511_s18, %s656_s18  }
 0x117   : >> { %643 = vst [vmem:[%s1221_s18] sm:$0xff] %v642_v26  ;;  %645 = vst [vmem:[%s1221_s18 + $0x8] sm:$0xff] %v644_v27  ;;  %v648_v29 = vld [vmem:[%s1225_s23 + $0x18] sm:$0xff]  ;;  %p651_p5 = scmp.ge.s32.totalorder %s650_s6, %s1459_s30  ;;  %p635_p6 = scmp.ge.s32.totalorder %s636_s5, %s1459_s30 }
 0x118   : >> { %647 = vst [vmem:[%s1221_s18 + $0x10] sm:$0xff] %v646_v28  ;;  %649 = vst [vmem:[%s1221_s18 + $0x18] sm:$0xff] %v648_v29 }
 0x119   : >> { %s1526_s6 = smov (%p651_p5, %s650_s6), 0  ;;  %638 = sbr.rel (!%p635_p6) target bundleno = 278 (0x116), region = 222 }
 0x11a   : >> { %s922_s7 = sshll.u32 %s1526_s6, 5  ;;  %s1513_s24 = smov %s1526_s6 }
 0x11b   : >> { %s655_s23 = scalar_lea.vmem %s1340_s9, %s922_s7 [#allocation3]   ;;  %s656_s18 = scalar_lea.vmem %s1453_s28, %s922_s7  }
 0x120 PF: > { %s1484_s8 = sand.u32 3, %s1524_s21   ;;  %s936_s10 = sshll.u32 %s1459_s30, 5 }
 0x121   : > { %s661_s11 = scalar_lea.vmem %s1340_s9, %s936_s10 [#allocation3]   ;;  %s663_s12 = scalar_lea.vmem %s1453_s28, %s936_s10  }
 0x122   : > { %p927_p7 = scmp.le.s32.totalorder %s1484_s8, 0 }
 0x123   : > { %s1235_s15 = smov (!%p927_p7), %s663_s12   ;;  %s1239_s17 = smov (!%p927_p7), %s661_s11  }
 0x124   : > { %833 = sbr.rel (%p927_p7) target bundleno = 309 (0x135), region = 227  ;;  %s1243_s20 = smov (!%p927_p7), 0  }
 0x125   : > { %s1247_s14 = smov (!%p927_p7), 0  }
 0x12b LB: >> { %v673_v30 = vld [vmem:[%s1241_s17] sm:$0xff]  ;;  %s675_s13 = sadd.s32 1, %s1245_s20  ;;  %s667_s14 = sadd.s32 1, %s1249_s14   ;;  %s1249_s14 = sphi %s1247_s14, %s667_s14   ;;  %s1245_s20 = sphi %s1243_s20, %s1244_s20   ;;  %s1241_s17 = sphi %s1239_s17, %s680_s17   ;;  %s1237_s15 = sphi %s1235_s15, %s681_s15  }
 0x12c   : >> { %674 = vst [vmem:[%s1237_s15] sm:$0xff] %v673_v30  ;;  %p676_p8 = scmp.ge.s32.totalorder %s675_s13, %s1484_s8  ;;  %p666_p9 = scmp.ge.s32.totalorder %s667_s14, %s1484_s8 }
 0x12e   : >> { %s1528_s13 = smov (%p676_p8, %s675_s13), 0  ;;  %669 = sbr.rel (!%p666_p9) target bundleno = 299 (0x12b), region = 233 }
 0x12f   : >> { %s928_s9 = sshll.u32 %s1528_s13, 3  ;;  %s1244_s20 = smov %s1528_s13  }
 0x130   : >> { %s680_s17 = scalar_lea.vmem %s661_s11, %s928_s9 [#allocation3]   ;;  %s681_s15 = scalar_lea.vmem %s663_s12, %s928_s9  }
 0x135 PF: > { %p12_p10 = scmp.ge.s32.totalorder %s1292_s19, 5   ;;  %s1514_s15 = smov %s1181_s16 }
 0x136   : > { %s1515_s16 = smov %s1300_s22  ;;  %s1516_s17 = smov %s1292_s19 }
 0x137   :  { %14 = sbr.rel (!%p12_p10) target bundleno = 2 (0x2), region = 244 }

</bundles_post_ra>
